<compile_context>
chip_gen: v5e
topology: v5e:2x2
jax: 0.10.0
libtpu: 0.0.40
codegen_flags: <defaults>
</compile_context>

<pallas_src>
import numpy as np
import jax
import jax.numpy as jnp
from jax import lax
from jax.experimental import pallas as pl
from jax.experimental.pallas import tpu as pltpu

IMAGENET_MEAN = np.array([0.485, 0.456, 0.406], dtype=np.float32)
IMAGENET_STD = np.array([0.229, 0.224, 0.225], dtype=np.float32)
DYNAMIC_RANGE = 255.0

# dtypes we let flow into the kernel unchanged (cast happens in VMEM).
_KERNEL_IN_DTYPES = (jnp.uint8, jnp.int8, jnp.bfloat16, jnp.float16, jnp.float32)

_BF16_SUBLANE = 16  # bf16 sublane packing (2 rows per sublane x 8 sublanes)


def _bilinear_matrix(in_size: int, out_size: int) -> np.ndarray:
    """Row-interpolation matrix M (out_size, in_size):  y = M @ x.

    align_corners=False, no antialias (matches F.interpolate bilinear)."""
    if in_size == out_size:
        return np.eye(out_size, dtype=np.float32)
    scale = in_size / out_size
    out_idx = np.arange(out_size, dtype=np.float64)
    src = (out_idx + 0.5) * scale - 0.5
    src = np.clip(src, 0.0, in_size - 1)          # PyTorch clamps src >= 0
    lo = np.floor(src).astype(np.int64)
    hi = np.minimum(lo + 1, in_size - 1)
    w_hi = (src - lo).astype(np.float32)
    w_lo = 1.0 - w_hi
    mat = np.zeros((out_size, in_size), dtype=np.float32)
    mat[np.arange(out_size), lo] += w_lo
    mat[np.arange(out_size), hi] += w_hi
    return mat


def _make_kernel(TB, C, H_in, W_in, H_out, W_out, h_first, stacked):
    """Kernel over one (TB, C, H_in, W_in) block of native-dtype pixels.

    x_ref     : (TB, C, H_in, W_in)   e.g. uint8
    rh_ref    : (H_out, H_in) bf16    shared row-interpolation matrix
    rwt_ref   : (W_in, W_out) bf16    shared column-interpolation matrix (T)
    scale_ref : (C,) f32 SMEM         1/(255*std[c])
    bias_ref  : (C,) f32 SMEM         -mean[c]/std[c]
    o_ref     : (TB, C, H_out, W_out)
    tmp_ref   : bf16 VMEM scratch (stacked paths only)
    """
    unroll = (TB * C) <= 8

    def to_bf16(v):
        # uint8 -> f32 -> bf16 (exact for 0..255); avoids relying on a direct
        # integer->bf16 cast in Mosaic.
        return v.astype(jnp.float32).astype(jnp.bfloat16)

    def kernel(x_ref, rh_ref, rwt_ref, scale_ref, bias_ref, o_ref, *scratch):
        # Hoisted loop invariants: weights + SMEM scalars read once.
        rh = rh_ref[...]                                   # (H_out, H_in) bf16
        rwt = rwt_ref[...]                                 # (W_in, W_out) bf16
        scales = [scale_ref[c] for c in range(C)]
        biases = [bias_ref[c] for c in range(C)]

        if stacked and h_first:
            tmp_ref, = scratch                             # (TB*C*H_out, W_in) bf16

            # Pass 1: per-plane H-resize into the stacked scratch. fori_loop
            # bounds liveness to one plane's temporaries.
            def body(n, carry):
                for c in range(C):
                    plane = to_bf16(x_ref[n, c])                          # (H_in, W_in)
                    t = jnp.dot(rh, plane,
                                preferred_element_type=jnp.float32)       # (H_out, W_in)
                    row0 = pl.multiple_of((n * C + c) * H_out, H_out)
                    tmp_ref[pl.ds(row0, H_out), :] = t.astype(jnp.bfloat16)
                return carry
            lax.fori_loop(0, TB, body, 0, unroll=unroll)

            # Pass 2: ONE stacked W-resize matmul (shared matrix, M=TB*C*H_out).
            big = jnp.dot(tmp_ref[...], rwt,
                          preferred_element_type=jnp.float32)             # (TB*C*H_out, W_out)
            out4 = big.reshape(TB, C, H_out, W_out)        # free view (H_out % 8 == 0)
            for c in range(C):                              # C == 3: FMA epilogue per channel
                o_ref[:, c] = (out4[:, c] * scales[c] + biases[c]).astype(o_ref.dtype)

        elif stacked:  # w_first
            tmp_ref, = scratch                             # (TB*C*H_in, W_out) bf16

            # Pass 1: ONE stacked W-resize matmul over the whole block.
            xb = to_bf16(x_ref[...]).reshape(TB * C * H_in, W_in)  # free view (H_in % 16 == 0)
            tmp = jnp.dot(xb, rwt, preferred_element_type=jnp.float32)
            tmp_ref[...] = tmp.astype(jnp.bfloat16)

            # Pass 2: per-plane H-resize + FMA epilogue, liveness bounded.
            def body(n, carry):
                for c in range(C):
                    row0 = pl.multiple_of((n * C + c) * H_in, H_in)
                    t = tmp_ref[pl.ds(row0, H_in), :]                      # (H_in, W_out) bf16
                    res = jnp.dot(rh, t, preferred_element_type=jnp.float32)
                    o_ref[n, c] = (res * scales[c] + biases[c]).astype(o_ref.dtype)
                return carry
            lax.fori_loop(0, TB, body, 0, unroll=unroll)

        else:
            # Fallback (sublane-unaligned H): both matmuls per plane; no large
            # reshapes, no scratch, per-plane liveness only.
            def body(n, carry):
                for c in range(C):
                    plane = to_bf16(x_ref[n, c])
                    if h_first:
                        t = jnp.dot(rh, plane, preferred_element_type=jnp.float32)
                        res = jnp.dot(t.astype(jnp.bfloat16), rwt,
                                      preferred_element_type=jnp.float32)
                    else:
                        t = jnp.dot(plane, rwt, preferred_element_type=jnp.float32)
                        res = jnp.dot(rh, t.astype(jnp.bfloat16),
                                      preferred_element_type=jnp.float32)
                    o_ref[n, c] = (res * scales[c] + biases[c]).astype(o_ref.dtype)
                return carry
            lax.fori_loop(0, TB, body, 0, unroll=unroll)

    return kernel


def detr_preprocess(img_or_batch, target_resolution=(224, 224), out_dtype=jnp.float32):
    """Mirror of DetrPreprocessor.forward.

    Accepts a 4D NCHW batch, a single 3D CHW / HWC image, or a list of
    same-shaped 3D images.  Returns (normalized NCHW array, list of scales)."""
    x = img_or_batch
    if isinstance(x, (list, tuple)):
        x = jnp.stack([jnp.asarray(v) for v in x])
    x = jnp.asarray(x)
    if x.ndim == 3:
        if x.shape[0] != 3 and x.shape[-1] == 3:
            x = jnp.transpose(x, (2, 0, 1))       # HWC -> CHW
        x = x[None]                               # add batch dim
    assert x.ndim == 4 and x.shape[1] == 3, f"expected NCHW with C=3, got {x.shape}"

    # Keep narrow pixel dtypes (uint8/bf16/...) — cast happens in-kernel.
    if x.dtype not in _KERNEL_IN_DTYPES:
        x = x.astype(jnp.float32)

    B, C, H_in, W_in = x.shape
    H_out, W_out = target_resolution
    if (H_in, W_in) != (H_out, W_out):
        scale = (H_in / H_out, W_in / W_out)
    else:
        scale = (1.0, 1.0)
    scales = [scale] * B

    # Shared interpolation matrices in bf16; per-channel scale/bias as SMEM
    # scalars (FMA epilogue in the kernel).
    rh = jnp.asarray(_bilinear_matrix(H_in, H_out), dtype=jnp.bfloat16)      # (H_out, H_in)
    rwt = jnp.asarray(_bilinear_matrix(W_in, W_out).T, dtype=jnp.bfloat16)   # (W_in, W_out)
    ch_scale = jnp.asarray(1.0 / (DYNAMIC_RANGE * IMAGENET_STD), dtype=jnp.float32)  # (C,)
    ch_bias = jnp.asarray(-IMAGENET_MEAN / IMAGENET_STD, dtype=jnp.float32)           # (C,)

    # Matmul order: minimize FLOPs / intermediate size.
    cost_h_first = H_out * W_in * (H_in + W_out)
    cost_w_first = H_in * W_out * (W_in + H_out)
    h_first = cost_h_first <= cost_w_first
    # Stacked second matmul only when the bf16 sublane extents are tile-aligned
    # (so flat reshapes / strided scratch slices are free views).
    stacked = (H_out % _BF16_SUBLANE == 0) if h_first else (H_in % _BF16_SUBLANE == 0)

    in_isize = x.dtype.itemsize
    out_isize = jnp.dtype(out_dtype).itemsize

    def vmem_bytes(tb):
        in_blk = tb * C * H_in * W_in * in_isize
        out_blk = tb * C * H_out * W_out * out_isize
        need = 2 * (in_blk + out_blk)                         # BlockSpec double-buffers blocks
        need += 2 * 2 * (H_out * H_in + W_in * W_out)         # bf16 weights (x2 safety)
        if not stacked:
            need += 4 * (H_in * W_in + H_out * W_in + H_in * W_out + H_out * W_out)
        elif h_first:
            need += 2 * tb * C * H_out * W_in                 # bf16 stacked scratch
            need += 4 * tb * C * H_out * W_out                # stacked f32 matmul result
            need += 4 * tb * H_out * W_out                    # one epilogue channel slab
            need += 4 * (H_in * W_in + H_out * W_in)          # per-plane pass-1 temporaries
        else:
            need += 2 * tb * C * H_in * W_out                 # bf16 stacked scratch
            need += (4 + 2) * tb * C * H_in * W_in            # f32+bf16 cast of the block
            need += 4 * tb * C * H_in * W_out                 # stacked f32 matmul result
            need += 4 * H_out * W_out
        return need

    # Generation-aware VMEM budget (128 MiB v5e/v6e, 64 MiB v7x), ~25% headroom.
    try:
        vmem_cap = int(pltpu.get_tpu_info().vmem_capacity_bytes)
    except Exception:
        vmem_cap = 64 * 2**20
    budget = int(vmem_cap * 0.75)

    # Batch block: largest divisor of B fitting the budget while keeping the
    # grid >= min(B, 4) steps (keeps both v7x TCs + the DMA pipeline busy).
    min_steps = min(B, 4)
    tb_cap = max(1, B // min_steps)
    TB = 1
    for tb in range(1, B + 1):
        if B % tb == 0 and tb <= tb_cap and vmem_bytes(tb) <= budget:
            TB = tb
    needed = vmem_bytes(TB)
    vmem_limit = max(needed * 5 // 4, 32 * 2**20)
    vmem_limit = min(vmem_limit, int(vmem_cap * 0.85))
    vmem_limit = int(max(vmem_limit, min(needed, vmem_cap)))

    kernel = _make_kernel(TB, C, H_in, W_in, H_out, W_out, h_first, stacked)

    scratch_shapes = []
    if stacked and h_first:
        scratch_shapes = [pltpu.VMEM((TB * C * H_out, W_in), jnp.bfloat16)]
    elif stacked:
        scratch_shapes = [pltpu.VMEM((TB * C * H_in, W_out), jnp.bfloat16)]

    out = pl.pallas_call(
        kernel,
        out_shape=jax.ShapeDtypeStruct((B, C, H_out, W_out), out_dtype),
        grid=(B // TB,),
        in_specs=[
            # TB whole images (all channels) per grid step, native dtype.
            pl.BlockSpec((TB, C, H_in, W_in), lambda n: (n, 0, 0, 0)),
            # Shared interpolation matrices: same block for every grid step.
            pl.BlockSpec((H_out, H_in), lambda n: (0, 0)),
            pl.BlockSpec((W_in, W_out), lambda n: (0, 0)),
            # Per-channel scale / bias as SMEM scalars.
            pl.BlockSpec(memory_space=pltpu.MemorySpace.SMEM),
            pl.BlockSpec(memory_space=pltpu.MemorySpace.SMEM),
        ],
        out_specs=pl.BlockSpec((TB, C, H_out, W_out), lambda n: (n, 0, 0, 0)),
        scratch_shapes=scratch_shapes,
        compiler_params=pltpu.CompilerParams(
            dimension_semantics=("parallel",),
            vmem_limit_bytes=vmem_limit),
    )(x, rh, rwt, ch_scale, ch_bias)

    return out, scales


def _reference(x, target_resolution):
    """Pure-JAX f32 reference for correctness check."""
    xf = jnp.asarray(x).astype(jnp.float32)
    B, C, H_in, W_in = xf.shape
    H_out, W_out = target_resolution
    rh = jnp.asarray(_bilinear_matrix(H_in, H_out))
    rwt = jnp.asarray(_bilinear_matrix(W_in, W_out).T)
    tmp = jnp.einsum("oi,bcij->bcoj", rh, xf)
    res = jnp.einsum("bcoj,jw->bcow", tmp, rwt)
    res = res / DYNAMIC_RANGE
    mean = jnp.asarray(IMAGENET_MEAN)[None, :, None, None]
    std = jnp.asarray(IMAGENET_STD)[None, :, None, None]
    return (res - mean) / std


if __name__ == "__main__":
    key = jax.random.PRNGKey(0)
    k1, k2, k3 = jax.random.split(key, 3)

    # bf16 matmul operands => tolerances relaxed vs the f32 reference
    # (interp-weight / intermediate rounding ~2^-9 relative on 0..255 pixels).
    TOL = dict(rtol=2e-2, atol=6e-2)

    # Case 1: uint8 NCHW batch, 32x24 -> 16x16.  H-resize-first, stacked
    # W-resize matmul path (H_out % 16 == 0).
    x1 = jax.random.randint(k1, (2, 3, 32, 24), 0, 256, dtype=jnp.int32).astype(jnp.uint8)
    out1, scales1 = detr_preprocess(x1, target_resolution=(16, 16))
    out1 = jax.block_until_ready(out1)
    assert out1.shape == (2, 3, 16, 16), out1.shape
    assert out1.dtype == jnp.float32
    assert scales1 == [(32 / 16, 24 / 16)] * 2, scales1
    np.testing.assert_allclose(np.asarray(out1),
                               np.asarray(_reference(x1, (16, 16))), **TOL)

    # Case 2: uint8 NCHW batch, 16x48 -> 16x8.  W-resize-first, stacked
    # first-matmul path (H_in % 16 == 0).
    x2 = jax.random.randint(k2, (2, 3, 16, 48), 0, 256, dtype=jnp.int32).astype(jnp.uint8)
    out2, scales2 = detr_preprocess(x2, target_resolution=(16, 8))
    out2 = jax.block_until_ready(out2)
    assert out2.shape == (2, 3, 16, 8), out2.shape
    assert out2.dtype == jnp.float32
    assert scales2 == [(16 / 16, 48 / 8)] * 2, scales2
    np.testing.assert_allclose(np.asarray(out2),
                               np.asarray(_reference(x2, (16, 8))), **TOL)

    # Case 3: single HWC uint8 image, 24x20 -> 12x16.  Sublane-unaligned H,
    # exercises the fully per-plane fallback path + HWC->CHW handling.
    x3 = jax.random.randint(k3, (24, 20, 3), 0, 256, dtype=jnp.int32).astype(jnp.uint8)
    out3, scales3 = detr_preprocess(x3, target_resolution=(12, 16))
    out3 = jax.block_until_ready(out3)
    assert out3.shape == (1, 3, 12, 16), out3.shape
    assert scales3 == [(24 / 12, 20 / 16)], scales3
    x3_chw = jnp.transpose(x3, (2, 0, 1))[None]
    np.testing.assert_allclose(np.asarray(out3),
                               np.asarray(_reference(x3_chw, (12, 16))), **TOL)

    print("KERNEL_OK")
</pallas_src>

<mosaic_0001>
module attributes {stable_mosaic.version = 11 : i64} {
  func.func @kernel(%arg0: i32, %arg1: memref<1x3x32x24xi8, #tpu.memory_space<vmem>>, %arg2: memref<16x32xbf16, #tpu.memory_space<vmem>>, %arg3: memref<24x16xbf16, #tpu.memory_space<vmem>>, %arg4: memref<3xf32, #tpu.memory_space<smem>>, %arg5: memref<3xf32, #tpu.memory_space<smem>>, %arg6: memref<1x3x16x16xf32, #tpu.memory_space<vmem>>, %arg7: memref<48x24xbf16, #tpu.memory_space<vmem>>) attributes {dimension_semantics = [#tpu.dimension_semantics<parallel>], iteration_bounds = array<i64: 2>, scalar_prefetch = 0 : i64, scratch_operands = 1 : i64, tpu.core_type = #tpu.core_type<tc>, window_params = [{transform_indices = @transform_0, window_bounds = array<i64: 1, 3, 32, 24>}, {pipeline_mode = #tpu.pipeline_mode<synchronous>, transform_indices = @transform_1, window_bounds = array<i64: 16, 32>}, {pipeline_mode = #tpu.pipeline_mode<synchronous>, transform_indices = @transform_2, window_bounds = array<i64: 24, 16>}, {transform_indices = @transform_3, window_bounds = array<i64: 3>}, {transform_indices = @transform_4, window_bounds = array<i64: 3>}, {transform_indices = @transform_5, window_bounds = array<i64: 1, 3, 16, 16>}]} {
    %c0 = arith.constant 0 : index
    %c0_0 = arith.constant 0 : index
    %0 = vector.load %arg2[%c0, %c0_0] : memref<16x32xbf16, #tpu.memory_space<vmem>>, vector<16x32xbf16>
    %c0_1 = arith.constant 0 : index
    %c0_2 = arith.constant 0 : index
    %1 = vector.load %arg3[%c0_1, %c0_2] : memref<24x16xbf16, #tpu.memory_space<vmem>>, vector<24x16xbf16>
    %c0_3 = arith.constant 0 : index
    %2 = memref.load %arg4[%c0_3] : memref<3xf32, #tpu.memory_space<smem>>
    %c1 = arith.constant 1 : index
    %3 = memref.load %arg4[%c1] : memref<3xf32, #tpu.memory_space<smem>>
    %c2 = arith.constant 2 : index
    %4 = memref.load %arg4[%c2] : memref<3xf32, #tpu.memory_space<smem>>
    %c0_4 = arith.constant 0 : index
    %5 = memref.load %arg5[%c0_4] : memref<3xf32, #tpu.memory_space<smem>>
    %c1_5 = arith.constant 1 : index
    %6 = memref.load %arg5[%c1_5] : memref<3xf32, #tpu.memory_space<smem>>
    %c2_6 = arith.constant 2 : index
    %7 = memref.load %arg5[%c2_6] : memref<3xf32, #tpu.memory_space<smem>>
    %c0_i32 = arith.constant 0 : i32
    %8 = arith.index_cast %c0_i32 : i32 to index
    %c0_7 = arith.constant 0 : index
    %c0_8 = arith.constant 0 : index
    %c0_9 = arith.constant 0 : index
    %9 = vector.load %arg1[%8, %c0_7, %c0_8, %c0_9] : memref<1x3x32x24xi8, #tpu.memory_space<vmem>>, vector<1x1x32x24xi8>
    %10 = vector.shape_cast %9 : vector<1x1x32x24xi8> to vector<32x24xi8>
    %11 = arith.uitofp %10 : vector<32x24xi8> to vector<32x24xf32>
    %12 = arith.truncf %11 : vector<32x24xf32> to vector<32x24xbf16>
    %cst = arith.constant dense<0.000000e+00> : vector<16x24xf32>
    %13 = tpu.matmul %0, %12, %cst {dimension_numbers = #tpu.dot_dimension_numbers<[1], [0], [0], [1], [0, 0, 1, 1], [], []>} : vector<16x32xbf16>, vector<32x24xbf16>, vector<16x24xf32> -> vector<16x24xf32>
    %c3_i32 = arith.constant 3 : i32
    %14 = arith.muli %c0_i32, %c3_i32 : i32
    %c0_i32_10 = arith.constant 0 : i32
    %15 = arith.addi %14, %c0_i32_10 : i32
    %c16_i32 = arith.constant 16 : i32
    %16 = arith.muli %15, %c16_i32 : i32
    %17 = tpu.assume_multiple %16, 16 : i32
    %18 = arith.truncf %13 : vector<16x24xf32> to vector<16x24xbf16>
    %19 = arith.index_cast %17 : i32 to index
    %c0_11 = arith.constant 0 : index
    %20 = vector.load %arg7[%19, %c0_11] : memref<48x24xbf16, #tpu.memory_space<vmem>>, vector<16x24xbf16>
    tpu.vector_store %arg7[%19, %c0_11], %18 {strides = array<i32>} : memref<48x24xbf16, #tpu.memory_space<vmem>>, vector<16x24xbf16>,
    %21 = arith.index_cast %c0_i32 : i32 to index
    %c1_12 = arith.constant 1 : index
    %c0_13 = arith.constant 0 : index
    %c0_14 = arith.constant 0 : index
    %22 = vector.load %arg1[%21, %c1_12, %c0_13, %c0_14] : memref<1x3x32x24xi8, #tpu.memory_space<vmem>>, vector<1x1x32x24xi8>
    %23 = vector.shape_cast %22 : vector<1x1x32x24xi8> to vector<32x24xi8>
    %24 = arith.uitofp %23 : vector<32x24xi8> to vector<32x24xf32>
    %25 = arith.truncf %24 : vector<32x24xf32> to vector<32x24xbf16>
    %cst_15 = arith.constant dense<0.000000e+00> : vector<16x24xf32>
    %26 = tpu.matmul %0, %25, %cst_15 {dimension_numbers = #tpu.dot_dimension_numbers<[1], [0], [0], [1], [0, 0, 1, 1], [], []>} : vector<16x32xbf16>, vector<32x24xbf16>, vector<16x24xf32> -> vector<16x24xf32>
    %c3_i32_16 = arith.constant 3 : i32
    %27 = arith.muli %c0_i32, %c3_i32_16 : i32
    %c1_i32 = arith.constant 1 : i32
    %28 = arith.addi %27, %c1_i32 : i32
    %c16_i32_17 = arith.constant 16 : i32
    %29 = arith.muli %28, %c16_i32_17 : i32
    %30 = tpu.assume_multiple %29, 16 : i32
    %31 = arith.truncf %26 : vector<16x24xf32> to vector<16x24xbf16>
    %32 = arith.index_cast %30 : i32 to index
    %c0_18 = arith.constant 0 : index
    %33 = vector.load %arg7[%32, %c0_18] : memref<48x24xbf16, #tpu.memory_space<vmem>>, vector<16x24xbf16>
    tpu.vector_store %arg7[%32, %c0_18], %31 {strides = array<i32>} : memref<48x24xbf16, #tpu.memory_space<vmem>>, vector<16x24xbf16>,
    %34 = arith.index_cast %c0_i32 : i32 to index
    %c2_19 = arith.constant 2 : index
    %c0_20 = arith.constant 0 : index
    %c0_21 = arith.constant 0 : index
    %35 = vector.load %arg1[%34, %c2_19, %c0_20, %c0_21] : memref<1x3x32x24xi8, #tpu.memory_space<vmem>>, vector<1x1x32x24xi8>
    %36 = vector.shape_cast %35 : vector<1x1x32x24xi8> to vector<32x24xi8>
    %37 = arith.uitofp %36 : vector<32x24xi8> to vector<32x24xf32>
    %38 = arith.truncf %37 : vector<32x24xf32> to vector<32x24xbf16>
    %cst_22 = arith.constant dense<0.000000e+00> : vector<16x24xf32>
    %39 = tpu.matmul %0, %38, %cst_22 {dimension_numbers = #tpu.dot_dimension_numbers<[1], [0], [0], [1], [0, 0, 1, 1], [], []>} : vector<16x32xbf16>, vector<32x24xbf16>, vector<16x24xf32> -> vector<16x24xf32>
    %c3_i32_23 = arith.constant 3 : i32
    %40 = arith.muli %c0_i32, %c3_i32_23 : i32
    %c2_i32 = arith.constant 2 : i32
    %41 = arith.addi %40, %c2_i32 : i32
    %c16_i32_24 = arith.constant 16 : i32
    %42 = arith.muli %41, %c16_i32_24 : i32
    %43 = tpu.assume_multiple %42, 16 : i32
    %44 = arith.truncf %39 : vector<16x24xf32> to vector<16x24xbf16>
    %45 = arith.index_cast %43 : i32 to index
    %c0_25 = arith.constant 0 : index
    %46 = vector.load %arg7[%45, %c0_25] : memref<48x24xbf16, #tpu.memory_space<vmem>>, vector<16x24xbf16>
    tpu.vector_store %arg7[%45, %c0_25], %44 {strides = array<i32>} : memref<48x24xbf16, #tpu.memory_space<vmem>>, vector<16x24xbf16>,
    %c1_i32_26 = arith.constant 1 : i32
    %c0_27 = arith.constant 0 : index
    %c0_28 = arith.constant 0 : index
    %47 = vector.load %arg7[%c0_27, %c0_28] : memref<48x24xbf16, #tpu.memory_space<vmem>>, vector<48x24xbf16>
    %cst_29 = arith.constant dense<0.000000e+00> : vector<48x16xf32>
    %48 = tpu.matmul %47, %1, %cst_29 {dimension_numbers = #tpu.dot_dimension_numbers<[1], [0], [0], [1], [0, 0, 1, 1], [], []>} : vector<48x24xbf16>, vector<24x16xbf16>, vector<48x16xf32> -> vector<48x16xf32>
    %49 = vector.shape_cast %48 : vector<48x16xf32> to vector<1x3x16x16xf32>
    %50 = vector.extract_strided_slice %49 {offsets = [0, 0, 0, 0], sizes = [1, 1, 16, 16], strides = [1, 1, 1, 1]} : vector<1x3x16x16xf32> to vector<1x1x16x16xf32>
    %51 = vector.shape_cast %50 : vector<1x1x16x16xf32> to vector<1x16x16xf32>
    %52 = vector.broadcast %2 : f32 to vector<1x16x16xf32>
    %53 = arith.mulf %51, %52 : vector<1x16x16xf32>
    %54 = vector.broadcast %5 : f32 to vector<1x16x16xf32>
    %55 = arith.addf %53, %54 : vector<1x16x16xf32>
    %c0_30 = arith.constant 0 : index
    %c0_31 = arith.constant 0 : index
    %c0_32 = arith.constant 0 : index
    %c0_33 = arith.constant 0 : index
    %56 = vector.load %arg6[%c0_30, %c0_31, %c0_32, %c0_33] : memref<1x3x16x16xf32, #tpu.memory_space<vmem>>, vector<1x1x16x16xf32>
    %57 = vector.shape_cast %56 : vector<1x1x16x16xf32> to vector<1x16x16xf32>
    %58 = vector.shape_cast %55 : vector<1x16x16xf32> to vector<1x1x16x16xf32>
    tpu.vector_store %arg6[%c0_30, %c0_31, %c0_32, %c0_33], %58 {strides = array<i32>} : memref<1x3x16x16xf32, #tpu.memory_space<vmem>>, vector<1x1x16x16xf32>,
    %59 = vector.extract_strided_slice %49 {offsets = [0, 1, 0, 0], sizes = [1, 1, 16, 16], strides = [1, 1, 1, 1]} : vector<1x3x16x16xf32> to vector<1x1x16x16xf32>
    %60 = vector.shape_cast %59 : vector<1x1x16x16xf32> to vector<1x16x16xf32>
    %61 = vector.broadcast %3 : f32 to vector<1x16x16xf32>
    %62 = arith.mulf %60, %61 : vector<1x16x16xf32>
    %63 = vector.broadcast %6 : f32 to vector<1x16x16xf32>
    %64 = arith.addf %62, %63 : vector<1x16x16xf32>
    %c0_34 = arith.constant 0 : index
    %c1_35 = arith.constant 1 : index
    %c0_36 = arith.constant 0 : index
    %c0_37 = arith.constant 0 : index
    %65 = vector.load %arg6[%c0_34, %c1_35, %c0_36, %c0_37] : memref<1x3x16x16xf32, #tpu.memory_space<vmem>>, vector<1x1x16x16xf32>
    %66 = vector.shape_cast %65 : vector<1x1x16x16xf32> to vector<1x16x16xf32>
    %67 = vector.shape_cast %64 : vector<1x16x16xf32> to vector<1x1x16x16xf32>
    tpu.vector_store %arg6[%c0_34, %c1_35, %c0_36, %c0_37], %67 {strides = array<i32>} : memref<1x3x16x16xf32, #tpu.memory_space<vmem>>, vector<1x1x16x16xf32>,
    %68 = vector.extract_strided_slice %49 {offsets = [0, 2, 0, 0], sizes = [1, 1, 16, 16], strides = [1, 1, 1, 1]} : vector<1x3x16x16xf32> to vector<1x1x16x16xf32>
    %69 = vector.shape_cast %68 : vector<1x1x16x16xf32> to vector<1x16x16xf32>
    %70 = vector.broadcast %4 : f32 to vector<1x16x16xf32>
    %71 = arith.mulf %69, %70 : vector<1x16x16xf32>
    %72 = vector.broadcast %7 : f32 to vector<1x16x16xf32>
    %73 = arith.addf %71, %72 : vector<1x16x16xf32>
    %c0_38 = arith.constant 0 : index
    %c2_39 = arith.constant 2 : index
    %c0_40 = arith.constant 0 : index
    %c0_41 = arith.constant 0 : index
    %74 = vector.load %arg6[%c0_38, %c2_39, %c0_40, %c0_41] : memref<1x3x16x16xf32, #tpu.memory_space<vmem>>, vector<1x1x16x16xf32>
    %75 = vector.shape_cast %74 : vector<1x1x16x16xf32> to vector<1x16x16xf32>
    %76 = vector.shape_cast %73 : vector<1x16x16xf32> to vector<1x1x16x16xf32>
    tpu.vector_store %arg6[%c0_38, %c2_39, %c0_40, %c0_41], %76 {strides = array<i32>} : memref<1x3x16x16xf32, #tpu.memory_space<vmem>>, vector<1x1x16x16xf32>,
    return
  }
  func.func @transform_0(%arg0: i32) -> (i32, i32, i32, i32) {
    %c0_i32 = arith.constant 0 : i32
    %c0_i32_0 = arith.constant 0 : i32
    %c0_i32_1 = arith.constant 0 : i32
    %c0_i32_2 = arith.constant 0 : i32
    return %arg0, %c0_i32, %c0_i32_0, %c0_i32_1 : i32, i32, i32, i32
  }
  func.func @transform_1(%arg0: i32) -> (i32, i32) {
    %c0_i32 = arith.constant 0 : i32
    %c0_i32_0 = arith.constant 0 : i32
    %c0_i32_1 = arith.constant 0 : i32
    return %c0_i32, %c0_i32_0 : i32, i32
  }
  func.func @transform_2(%arg0: i32) -> (i32, i32) {
    %c0_i32 = arith.constant 0 : i32
    %c0_i32_0 = arith.constant 0 : i32
    %c0_i32_1 = arith.constant 0 : i32
    return %c0_i32, %c0_i32_0 : i32, i32
  }
  func.func @transform_3(%arg0: i32) -> i32 {
    %c0_i32 = arith.constant 0 : i32
    %c0_i32_0 = arith.constant 0 : i32
    return %c0_i32 : i32
  }
  func.func @transform_4(%arg0: i32) -> i32 {
    %c0_i32 = arith.constant 0 : i32
    %c0_i32_0 = arith.constant 0 : i32
    return %c0_i32 : i32
  }
  func.func @transform_5(%arg0: i32) -> (i32, i32, i32, i32) {
    %c0_i32 = arith.constant 0 : i32
    %c0_i32_0 = arith.constant 0 : i32
    %c0_i32_1 = arith.constant 0 : i32
    %c0_i32_2 = arith.constant 0 : i32
    return %arg0, %c0_i32, %c0_i32_0, %c0_i32_1 : i32, i32, i32, i32
  }
}

</mosaic_0001>

<bundles_post_ra>
// kernel: tpu_custom_call.1
= control target key start
LH: loop header
LB: loop body
LE: loop exit
PB: predicated region body
PF: predicated region fallthrough
CT: control target
= control target key end

     0   :  { %10 = vsyncpa [#allocation5], 0  ;;  %s953_s0 = inlined_call_operand.vmem [shape: u8[2,3,32,24], index: 0, kind: input, shape index: {}]   ;;  %s954_s1 = inlined_call_operand.vmem [shape: bf16[16,32], index: 1, kind: input, shape index: {}]   ;;  %s955_s2 = inlined_call_operand.vmem [shape: bf16[24,16], index: 2, kind: input, shape index: {}]   ;;  %s956_s3 = inlined_call_operand.vmem [shape: f32[3], index: 3, kind: input, shape index: {}]   ;;  %s957_s4 = inlined_call_operand.vmem [shape: f32[3], index: 4, kind: input, shape index: {}]   ;;  %s958_s5 = inlined_call_operand.hbm [shape: f32[2,3,16,16], index: 5, kind: output, shape index: {}]  }
   0x1   :  { %11 = vsyncpa [#allocation7], 0 }
   0x2   :  { %12 = vsyncpa [#allocation4], 0 }
   0x3   :  { %14 = vsyncpa [#allocation4 + $0x1], 0  ;;  %s826_s18 = smov 0   ;;  %s828_s19 = smov 0  }
   0x4   :  { %s830_s20 = smov 0   ;;  %s832_s21 = smov 0  }
   0x5 LB: > { %s847_s22 = sadd.s32 4294967295, %s790_s21   ;;  %s570_s23 = sadd.s32 4294967294, %s790_s21   ;;  %s790_s21 = sphi %s832_s21, %s964_s21   ;;  %s786_s20 = sphi %s830_s20, %s963_s20   ;;  %s782_s19 = sphi %s828_s19, %s962_s19   ;;  %s778_s18 = sphi %s826_s18, %s961_s18  }
   0x6   : > { %s851_s24 = sadd.s32 1, %s790_s21   ;;  %s137_s25 = sadd.s32 1, %s786_s20 }
   0x7   : > { %s134_s26 = ssub.s32 %s790_s21, %s851_s24  ;;  %p147_p0 = scmp.ne.s32.totalorder %s786_s20, %s782_s19 }
   0x8   : > { %p135_p1 = scmp.eq.s32.totalorder %s134_s26, 0  ;;  %p148_p2 = scmp.eq.s32.totalorder %s847_s22, 1 }
   0x9   : > { %p153_p3 = scmp.ne.s32.totalorder %s782_s19, %s778_s18  ;;  %p154_p4 = scmp.eq.s32.totalorder %s570_s23, 1 }
   0xa   : > { %s862_s27 = scalar_select %p135_p1, %s786_s20, %s137_s25  }
   0xb   : > { %p864_p5 = por %p148_p2, %p147_p0  ;;  %p868_p6 = por %p154_p4, %p153_p3 }
   0xc   : > { %p571_p7 = scmp.ge.s32.totalorder %s790_s21, 1  ;;  %p161_p8 = scmp.lt.s32.totalorder %s790_s21, 3 }
   0xd   : > { %p649_p9 = scmp.eq.s32.totalorder %s847_s22, 0  ;;  %s179_s7 = sshll.u32 %s956_s3, 4  ;;  %s180_s7 = int_to_ptr.vmem [resolvable:$true] %s179_s7 }
   0xe   : > { %p162_p10 = pnand %p571_p7, %p161_p8  ;;  %s189_s10 = sshll.u32 %s957_s4, 4  ;;  %s190_s10 = int_to_ptr.vmem [resolvable:$true] %s189_s10 }
   0xf   : > { %s792_s11 = smov [#allocation3]   ;;  %s793_s12 = smov [#allocation6]  }
  0x10   : > { %p638_p11 = pneg %p162_p10 }
  0x11   : > { %210 = sbr.rel (%p162_p10) target bundleno = 358 (0x166), region = 40 }
  0x12   : > { %p639_p12 = pnand %p649_p9, %p638_p11 }
  0x14   : > { %641 = dma.vmem_to_smem (!%p639_p12), %s180_s7, 16, %s792_s11, [#allocation5]  }
  0x15   : > { %644 = dma.vmem_to_smem (!%p639_p12), %s190_s10, 16, %s793_s12, [#allocation7]  }
  0x16   : > { %765 = dma.done.wait (%p649_p9), [#allocation5], 16  }
  0x17   : > { %767 = vsyncadd (%p649_p9), [#allocation5], 4294967280 }
  0x18   : > { %769 = dma.done.wait (%p649_p9), [#allocation7], 16  }
  0x19   : > { %771 = vsyncadd (%p649_p9), [#allocation7], 4294967280 }
  0x1a   : > { %222 = sfence }
  0x1b   : > { %p245_p13 = scmp.lt.s32.totalorder %s847_s22, 1  ;;  %v618_v41 = vld [vmem:[%s954_s1] sm:$0xff]  ;;  %vm282_vm0 = vcmask 261120   ;;  %v255_v46 = vld [vmem:[%s955_s2 + $0x8] sm:$0xf]  ;;  %vm415_vm1 = vcmask 1043456  }
  0x1c   : > { %v401_v47 = vunpack.c.l.b16 %v255_v46  ;;  %v619_v50 = vld [vmem:[%s955_s2] sm:$0xff]  ;;  %vm302_vm2 = vcmask 191488   ;;  %vm405_vm3 = vcmask 195584   ;;  %s256_s8 = sld [smem:[#allocation3]]  ;;  %s242_s12 = sand.u32 1, %s782_s19   ;;  %vm449_vm4 = vcmask 130048  }
  0x1d   : > { %s246_s13 = scalar_select %p245_p13, %s847_s22, 1 }
  0x1e   : > { %v403_v48 = vpack.c.b16 %v401_v47, %v401_v47  ;;  %s259_s9 = sld [smem:[#allocation6]] }
  0x1f   : > { %s626_s14 = smul.u32 24, %s246_s13  ;;  %s579_s10 = sld [smem:[#allocation3 + $0x1]] }
  0x20   : > { %v417_v49 = vsel %vm415_vm1, %v403_v48, 0  ;;  %s581_s11 = sld [smem:[#allocation6 + $0x1]]  ;;  %s625_s13 = smul.u32 48, %s242_s12 }
  0x21   : > { %s249_s17 = scalar_lea.vmem %s953_s0, %s626_s14  ;;  %623 = vmatpush.bf16.msra.mxu3 %v417_v49  ;;  %s580_s15 = sld [smem:[#allocation3 + $0x2]] }
  0x22   : > { %v588_v0 = vld [vmem:[%s249_s17 + $0x8] sm:$0xff]  ;;  %v590_v1 = vld [vmem:[%s249_s17 + $0x10] sm:$0xff]  ;;  %v262_v2 = vld [vmem:[%s249_s17] sm:$0xff]  ;;  %s244_s14 = scalar_lea.vmem [#allocation8], %s625_s13  ;;  %s582_s16 = sld [smem:[#allocation6 + $0x2]] }
  0x23   : > { %v309_v3 = vunpack.c.2.s8 %v588_v0  ;;  %v310_v4 = vunpack.c.3.s8 %v588_v0  ;;  %v344_v5 = vunpack.c.2.s8 %v590_v1  ;;  %v345_v6 = vunpack.c.3.s8 %v590_v1  ;;  %s627_s17 = smul.u32 48, %s847_s22  ;;  %s483_s30 = sshll.u32 %s244_s14, 4  ;;  %s484_s30 = int_to_ptr.vmem [resolvable:$true] %s483_s30 }
  0x24   : > { %v307_v7 = vunpack.c.0.s8 %v588_v0  ;;  %v308_v8 = vunpack.c.1.s8 %v588_v0  ;;  %v265_v9 = vunpack.c.2.s8 %v262_v2  ;;  %v266_v10 = vunpack.c.3.s8 %v262_v2  ;;  %s471_s22 = scalar_lea.sflag [#allocation4], %s242_s12 }
  0x25   : > { %v313_v11 = vand.u32 255, %v309_v3  ;;  %v314_v12 = vand.u32 255, %v310_v4  ;;  %v348_v13 = vand.u32 255, %v344_v5  ;;  %v349_v14 = vand.u32 255, %v345_v6  ;;  %624 = vmatpush.bf16.msra.mxu3 %v619_v50  ;;  %s482_s26 = scalar_lea.hbm %s958_s5, %s627_s17 }
  0x26   : > { %v311_v15 = vand.u32 255, %v307_v7  ;;  %v312_v16 = vand.u32 255, %v308_v8  ;;  %v269_v17 = vand.u32 255, %v265_v9  ;;  %v270_v18 = vand.u32 255, %v266_v10  ;;  %s485_s6 = sshll.u32 %s482_s26, 4  ;;  %s486_s6 = int_to_ptr.hbm [resolvable:$true] %s485_s6 }
  0x27   : > { %v317_v19 = vcvt.s32.f32 %v313_v11  ;;  %v318_v20 = vcvt.s32.f32 %v314_v12  ;;  %v352_v21 = vcvt.s32.f32 %v348_v13  ;;  %v353_v22 = vcvt.s32.f32 %v349_v14  ;;  %s734_s7 = sshra.s32 %s486_s6, 4  ;;  %s735_s7 = int_to_ptr.hbm [resolvable:$true] %s734_s7 }
  0x28   : > { %v315_v23 = vcvt.s32.f32 %v311_v15  ;;  %v316_v24 = vcvt.s32.f32 %v312_v16  ;;  %v273_v25 = vcvt.s32.f32 %v269_v17  ;;  %v274_v26 = vcvt.s32.f32 %v270_v18  ;;  %p741_p3 = scmp.lt.s32.totalorder %s735_s7, %s958_s5 }
  0x29   : > { %v320_v27 = vpack.c.bf16 %v318_v20, %v317_v19  ;;  %v355_v28 = vpack.c.bf16 %v353_v22, %v352_v21  ;;  %v342_v29 = vunpack.c.0.s8 %v590_v1  ;;  %v343_v30 = vunpack.c.1.s8 %v590_v1 }
  0x2a   : > { %v276_v31 = vpack.c.bf16 %v274_v26, %v273_v25  ;;  %v263_v32 = vunpack.c.0.s8 %v262_v2  ;;  %v264_v33 = vunpack.c.1.s8 %v262_v2  ;;  %v319_v34 = vpack.c.bf16 %v316_v24, %v315_v23 }
  0x2b   : > { %327 = vmatpush.bf16.msra.mxu1 %v320_v27  ;;  %362 = vmatpush.bf16.msra.mxu2 %v355_v28  ;;  %v346_v35 = vand.u32 255, %v342_v29  ;;  %v347_v36 = vand.u32 255, %v343_v30  ;;  %v443_v2 = vstv %s256_s8  ;;  %v446_v4 = vstv %s259_s9  ;;  %s736_s8 = scalar_lea.hbm %s735_s7, 48 }
  0x2c   : > { %292 = vmatpush.bf16.msra.mxu0 %v276_v31  ;;  %v267_v37 = vand.u32 255, %v263_v32  ;;  %v268_v38 = vand.u32 255, %v264_v33  ;;  %v452_v6 = vstv %s579_s10  ;;  %v455_v9 = vstv %s581_s11  ;;  %p737_p0 = scmp.ne.s32.totalorder %s735_s7, %s736_s8  ;;  %s740_s11 = scalar_lea.hbm %s958_s5, 96 }
  0x2d   : > { %v350_v39 = vcvt.s32.f32 %v346_v35  ;;  %v351_v40 = vcvt.s32.f32 %v347_v36  ;;  %v461_v18 = vstv %s580_s15  ;;  %v464_v20 = vstv %s582_s16  ;;  %p742_p4 = scmp.lt.s32.totalorder %s740_s11, %s736_s8 }
  0x2e   : > { %v271_v42 = vcvt.s32.f32 %v267_v37  ;;  %v272_v43 = vcvt.s32.f32 %v268_v38  ;;  %p738_p1 = pnand %p737_p0, %p864_p5 }
  0x2f   : > { %328 = vmatpush.bf16.msra.mxu1 %v319_v34  ;;  %v354_v44 = vpack.c.bf16 %v351_v40, %v350_v39  ;;  %p743_p7 = por %p742_p4, %p741_p3 }
  0x30   : > { %v275_v45 = vpack.c.bf16 %v272_v43, %v271_v42  ;;  %p739_p2 = pneg %p738_p1 }
  0x31   : > { %363 = vmatpush.bf16.msra.mxu2 %v354_v44 }
  0x32   : > { %589 = vmatmul.msk.bf16.vlgmr.msra.gmra.mxu1 %vm282_vm0, %v618_v41  ;;  %293 = vmatpush.bf16.msra.mxu0 %v275_v45  ;;  %p744_p8 = pnand %p743_p7, %p739_p2 }
  0x34   : > { %591 = vmatmul.msk.bf16.vlgmr.msra.gmra.mxu2 %vm282_vm0, %v618_v41 }
  0x35   : > { %587 = vmatmul.msk.bf16.vlgmr.msra.gmra.mxu0 %vm282_vm0, %v618_v41 }
  0x36   : > { %425 = vmatpush.bf16.msrb.mxu0 %v417_v49 }
  0x3a   : > { %426 = vmatpush.bf16.msrb.mxu0 %v619_v50 }
  0xaf   : > { %v330_v51 = vpop.f32.mrf.mxu1 }
  0xb0   : > { %v335_v52 = vpack.c.bf16 %v330_v51, %v330_v51 }
  0xb2   : > { %338 = vst.msk [vmem:[#allocation2 + $0x8] sm:$0xf] %vm302_vm2, %v335_v52  ;;  %v295_v53 = vpop.f32.mrf.mxu0 }
  0xb3   : > { %v300_v54 = vpack.c.bf16 %v295_v53, %v295_v53 }
  0xb5   : > { %303 = vst.msk [vmem:[#allocation2] sm:$0xf] %vm302_vm2, %v300_v54 }
  0xb7   : > { %v332_v55 = vpop.f32.mrf.mxu1  ;;  %v365_v56 = vpop.f32.mrf.mxu2 }
  0xb8   : > { %v336_v57 = vpack.c.bf16 %v332_v55, %v332_v55  ;;  %v370_v58 = vpack.c.bf16 %v365_v56, %v365_v56 }
  0xba   : > { %339 = vst.msk [vmem:[#allocation2 + $0xc] sm:$0xf] %vm302_vm2, %v336_v57  ;;  %v297_v59 = vpop.f32.mrf.mxu0 }
  0xbb   : > { %373 = vst.msk [vmem:[#allocation2 + $0x10] sm:$0xf] %vm302_vm2, %v370_v58  ;;  %v301_v60 = vpack.c.bf16 %v297_v59, %v297_v59 }
  0xbd   : > { %304 = vst.msk [vmem:[#allocation2 + $0x4] sm:$0xf] %vm302_vm2, %v301_v60 }
  0xbf   : > { %v367_v61 = vpop.f32.mrf.mxu2 }
  0xc0   : > { %v371_v62 = vpack.c.bf16 %v367_v61, %v367_v61 }
  0xc1   : > { %v621_v63 = vld [vmem:[#allocation2 + $0x8] sm:$0xff] }
  0xc2   : > { %374 = vst.msk [vmem:[#allocation2 + $0x14] sm:$0xf] %vm302_vm2, %v371_v62  ;;  %609 = vmatmul.msk.bf16.vlgmr.msra.gmra.mxu3 %vm405_vm3, %v621_v63 }
  0xc4   : > { %v620_v0 = vld [vmem:[#allocation2] sm:$0xff] }
  0xc5   : > { %608 = vmatmul.msk.bf16.vlgmr.msrb.gmra.mxu0 %vm405_vm3, %v620_v0 }
  0xc9   : > { %v622_v1 = vld [vmem:[#allocation2 + $0x10] sm:$0xff] }
  0xd2   : > { %610 = vmatmul.msk.bf16.gmra.mxu3 %vm405_vm3, %v622_v1 }
 0x142   : > { %v428_v3 = vpop.f32.mrf.mxu0 }
 0x143   : > { %v444_v5 = vmul.f32 %v443_v2, %v428_v3 }
 0x145   : > { %v447_v7 = vadd.f32 %v446_v4, %v444_v5  ;;  %v433_v8 = vpop.f32.mrf.mxu3 }
 0x146   : > { %v453_v10 = vmul.f32 %v452_v6, %v433_v8 }
 0x147   : > { %450 = vst.msk [vmem:[%s244_s14] sm:$0xff] %vm449_vm4, %v447_v7 }
 0x148   : > { %v456_v11 = vadd.f32 %v455_v9, %v453_v10 }
 0x14a   : > { %611 = vst.msk [vmem:[%s244_s14 + $0x10] sm:$0xff] %vm449_vm4, %v456_v11  ;;  %v430_v12 = vpop.f32.mrf.mxu0 }
 0x14b   : > { %v445_v13 = vmul.f32 %v443_v2, %v430_v12 }
 0x14d   : > { %v448_v14 = vadd.f32 %v446_v4, %v445_v13  ;;  %v435_v15 = vpop.f32.mrf.mxu3 }
 0x14e   : > { %v454_v16 = vmul.f32 %v452_v6, %v435_v15 }
 0x14f   : > { %451 = vst.msk [vmem:[%s244_s14 + $0x8] sm:$0xff] %vm449_vm4, %v448_v14 }
 0x150   : > { %v457_v17 = vadd.f32 %v455_v9, %v454_v16 }
 0x152   : > { %612 = vst.msk [vmem:[%s244_s14 + $0x18] sm:$0xff] %vm449_vm4, %v457_v17 }
 0x155   : > { %v438_v19 = vpop.f32.mrf.mxu3 }
 0x156   : > { %v462_v21 = vmul.f32 %v461_v18, %v438_v19 }
 0x158   : > { %v465_v22 = vadd.f32 %v464_v20, %v462_v21 }
 0x15a   : > { %613 = vst.msk [vmem:[%s244_s14 + $0x20] sm:$0xff] %vm449_vm4, %v465_v22 }
 0x15d   : > { %v440_v23 = vpop.f32.mrf.mxu3 }
 0x15e   : > { %v463_v24 = vmul.f32 %v461_v18, %v440_v23 }
 0x160   : > { %v466_v25 = vadd.f32 %v464_v20, %v463_v24 }
 0x162   : > { %614 = vst.msk [vmem:[%s244_s14 + $0x28] sm:$0xff] %vm449_vm4, %v466_v25 }
 0x163   : > { %747 = shalt.err (!%p744_p8)
}
 0x164   : > { %s794_s12 = smov 128   ;;  %s795_s14 = smov 8  }
 0x165   : > { %636 = dma.vmem_to_hbm [thread:$0]  (%p864_p5), %s484_s30, 768, %s486_s6, %s471_s22, %s794_s12, %s794_s12, %s795_s14  }
 0x166 PF: > { %p653_p9 = scmp.ge.s32.totalorder %s790_s21, 2  ;;  %s500_s16 = sand.u32 1, %s778_s18  }
 0x167   : > { %s501_s17 = scalar_lea.sflag [#allocation4], %s500_s16 }
 0x168   : > { %p646_p10 = pnand %p653_p9, %p868_p6 }
 0x16a   : > { %p647_p11 = pneg %p646_p10 }
 0x16c   : > { %773 = dma.done.wait (%p647_p11), %s501_s17, 768  }
 0x16d   : > { %775 = vsyncadd (%p647_p11), %s501_s17, 4294966528  ;;  %p17_p12 = scmp.ge.s32.totalorder %s851_s24, 4   ;;  %s961_s18 = smov %s782_s19 }
 0x16e   : > { %s962_s19 = smov %s786_s20  ;;  %s963_s20 = smov %s862_s27 }
 0x16f   : > { %s964_s21 = smov %s851_s24  ;;  %19 = sbr.rel (!%p17_p12) target bundleno = 5 (0x5), region = 90 }
 0x174   :  { %507 = vsyncpa [#allocation4], 1 }
 0x175   :  { %509 = vsyncpa [#allocation4 + $0x1], 1 }
 0x176   :  { %510 = vsyncpa [#allocation5], 1 }
 0x177   :  { %512 = vsyncpa [#allocation5 + $0x1], 1 }
 0x178   :  { %513 = vsyncpa [#allocation7], 1 }

</bundles_post_ra>
